<compile_context>
chip_gen: v6e
topology: v6e:2x2x1
jax: 0.10.0
libtpu: 0.0.40
codegen_flags: <defaults>
</compile_context>

<pallas_src>
import jax
import jax.numpy as jnp
from jax.experimental import pallas as pl
from jax.experimental.pallas import tpu as pltpu


def decoder_kernel(x_ref, w1_ref, b1_ref, w2_ref, b2_ref, o_ref):
    # Hidden layer: Linear + ReLU (MXU matmul, f32 accumulate).
    h = jnp.dot(x_ref[...], w1_ref[...], preferred_element_type=jnp.float32)
    h = jnp.maximum(h + b1_ref[...], 0.0)          # b1 is (1, H) -> broadcasts

    # Output layer: Linear + sigmoid.
    y = jnp.dot(h, w2_ref[...], preferred_element_type=jnp.float32)
    y = jax.nn.sigmoid(y + b2_ref[...])            # b2 is (1, O)
    o_ref[...] = y.astype(o_ref.dtype)


def _round_up(x, m):
    return ((x + m - 1) // m) * m


def decoder_forward(x, w1, b1, w2, b2, *, block_batch=4096):
    """x: (B, latent); w1: (latent, hidden); b1: (1, hidden);
       w2: (hidden, output); b2: (1, output)  ->  (B, output)

    block_batch: max rows per grid step. 4096 is safe on all generations
    (v5e 16 MiB scoped VMEM); on v7x it can be raised to 8192+.
    """
    B, L = x.shape
    H = w1.shape[1]
    O = w2.shape[1]

    # Batch tile: multiple of 8 (f32 sublane), capped at block_batch, and also
    # capped at ~B/2 so the parallel grid has >= 2 steps when B > 8 (keeps the
    # second v7x TensorCore busy).
    tb = max(8, min(block_batch, _round_up(pl.cdiv(B, 2), 8)))
    nb = pl.cdiv(B, tb)

    # NOTE: the last grid block may be ragged (nb*tb > B). Out-of-bounds rows
    # of that tile flow unspecified data through relu/sigmoid, which is
    # harmless: rows are independent and OOB writes are masked by Pallas.
    out = pl.pallas_call(
        decoder_kernel,
        out_shape=jax.ShapeDtypeStruct((B, O), jnp.float32),
        grid_spec=pl.GridSpec(
            grid=(nb,),
            in_specs=[
                pl.BlockSpec((tb, L), lambda i: (i, 0)),  # x: batch-tiled
                pl.BlockSpec((L, H), lambda i: (0, 0)),   # w1: resident
                pl.BlockSpec((1, H), lambda i: (0, 0)),   # b1: resident
                pl.BlockSpec((H, O), lambda i: (0, 0)),   # w2: resident
                pl.BlockSpec((1, O), lambda i: (0, 0)),   # b2: resident
            ],
            out_specs=pl.BlockSpec((tb, O), lambda i: (i, 0)),
        ),
        compiler_params=pltpu.CompilerParams(
            dimension_semantics=("parallel",)),  # independent batch tiles
    )(x, w1, b1, w2, b2)

    return out


def init_decoder_params(key, latent_size, hidden_size, output_size):
    """Deterministic synthetic init mimicking nn.Linear's uniform(-1/sqrt(fan_in), ...)."""
    k1, k2, k3, k4 = jax.random.split(key, 4)
    bound1 = 1.0 / jnp.sqrt(latent_size)
    bound2 = 1.0 / jnp.sqrt(hidden_size)
    # Stored as (in, out) == transpose of PyTorch's (out, in) weight layout.
    w1 = jax.random.uniform(k1, (latent_size, hidden_size), jnp.float32,
                            -bound1, bound1)
    b1 = jax.random.uniform(k2, (1, hidden_size), jnp.float32, -bound1, bound1)
    w2 = jax.random.uniform(k3, (hidden_size, output_size), jnp.float32,
                            -bound2, bound2)
    b2 = jax.random.uniform(k4, (1, output_size), jnp.float32, -bound2, bound2)
    return w1, b1, w2, b2


def _reference(x, w1, b1, w2, b2):
    return jax.nn.sigmoid(jnp.maximum(x @ w1 + b1, 0.0) @ w2 + b2)


if __name__ == "__main__":
    # Small shapes consistent with the module: Decoder(latent=8, hidden=32, output=64)
    batch, latent_size, hidden_size, output_size = 2, 8, 32, 64

    key = jax.random.PRNGKey(0)
    kx, kp = jax.random.split(key)
    x = jax.random.normal(kx, (batch, latent_size), jnp.float32)
    w1, b1, w2, b2 = init_decoder_params(kp, latent_size, hidden_size, output_size)

    out = decoder_forward(x, w1, b1, w2, b2)
    out = jax.block_until_ready(out)

    ref = _reference(x, w1, b1, w2, b2)
    assert out.shape == (batch, output_size)
    assert jnp.allclose(out, ref, atol=1e-5, rtol=1e-5)

    # Secondary check: exercise the multi-tile (grid > 1) + ragged-last-block path.
    x2 = jax.random.normal(jax.random.PRNGKey(1), (300, latent_size), jnp.float32)
    out2 = jax.block_until_ready(
        decoder_forward(x2, w1, b1, w2, b2, block_batch=128))
    ref2 = _reference(x2, w1, b1, w2, b2)
    assert out2.shape == (300, output_size)
    assert jnp.allclose(out2, ref2, atol=1e-5, rtol=1e-5)

    print("KERNEL_OK")
</pallas_src>

<mosaic_0001>
module attributes {stable_mosaic.version = 11 : i64} {
  func.func @decoder_kernel(%arg0: i32, %arg1: memref<8x8xf32, #tpu.memory_space<vmem>>, %arg2: memref<8x32xf32, #tpu.memory_space<vmem>>, %arg3: memref<1x32xf32, #tpu.memory_space<vmem>>, %arg4: memref<32x64xf32, #tpu.memory_space<vmem>>, %arg5: memref<1x64xf32, #tpu.memory_space<vmem>>, %arg6: memref<8x64xf32, #tpu.memory_space<vmem>>) attributes {dimension_semantics = [#tpu.dimension_semantics<parallel>], iteration_bounds = array<i64: 1>, scalar_prefetch = 0 : i64, scratch_operands = 0 : i64, tpu.core_type = #tpu.core_type<tc>, window_params = [{transform_indices = @transform_0, window_bounds = array<i64: 8, 8>}, {pipeline_mode = #tpu.pipeline_mode<synchronous>, transform_indices = @transform_1, window_bounds = array<i64: 8, 32>}, {pipeline_mode = #tpu.pipeline_mode<synchronous>, transform_indices = @transform_2, window_bounds = array<i64: 1, 32>}, {pipeline_mode = #tpu.pipeline_mode<synchronous>, transform_indices = @transform_3, window_bounds = array<i64: 32, 64>}, {pipeline_mode = #tpu.pipeline_mode<synchronous>, transform_indices = @transform_4, window_bounds = array<i64: 1, 64>}, {transform_indices = @transform_5, window_bounds = array<i64: 8, 64>}]} {
    %c0 = arith.constant 0 : index
    %c0_0 = arith.constant 0 : index
    %0 = vector.load %arg1[%c0, %c0_0] : memref<8x8xf32, #tpu.memory_space<vmem>>, vector<8x8xf32>
    %c0_1 = arith.constant 0 : index
    %c0_2 = arith.constant 0 : index
    %1 = vector.load %arg2[%c0_1, %c0_2] : memref<8x32xf32, #tpu.memory_space<vmem>>, vector<8x32xf32>
    %cst = arith.constant dense<0.000000e+00> : vector<8x32xf32>
    %2 = tpu.matmul %0, %1, %cst {dimension_numbers = #tpu.dot_dimension_numbers<[1], [0], [0], [1], [0, 0, 1, 1], [], []>} : vector<8x8xf32>, vector<8x32xf32>, vector<8x32xf32> -> vector<8x32xf32>
    %c0_3 = arith.constant 0 : index
    %c0_4 = arith.constant 0 : index
    %3 = vector.load %arg3[%c0_3, %c0_4] : memref<1x32xf32, #tpu.memory_space<vmem>>, vector<1x32xf32>
    %4 = vector.broadcast %3 : vector<1x32xf32> to vector<8x32xf32>
    %5 = arith.addf %2, %4 : vector<8x32xf32>
    %cst_5 = arith.constant 0.000000e+00 : f32
    %6 = vector.broadcast %cst_5 : f32 to vector<8x32xf32>
    %7 = arith.maximumf %5, %6 : vector<8x32xf32>
    %c0_6 = arith.constant 0 : index
    %c0_7 = arith.constant 0 : index
    %8 = vector.load %arg4[%c0_6, %c0_7] : memref<32x64xf32, #tpu.memory_space<vmem>>, vector<32x64xf32>
    %cst_8 = arith.constant dense<0.000000e+00> : vector<8x64xf32>
    %9 = tpu.matmul %7, %8, %cst_8 {dimension_numbers = #tpu.dot_dimension_numbers<[1], [0], [0], [1], [0, 0, 1, 1], [], []>} : vector<8x32xf32>, vector<32x64xf32>, vector<8x64xf32> -> vector<8x64xf32>
    %c0_9 = arith.constant 0 : index
    %c0_10 = arith.constant 0 : index
    %10 = vector.load %arg5[%c0_9, %c0_10] : memref<1x64xf32, #tpu.memory_space<vmem>>, vector<1x64xf32>
    %11 = vector.broadcast %10 : vector<1x64xf32> to vector<8x64xf32>
    %12 = arith.addf %9, %11 : vector<8x64xf32>
    %13 = arith.negf %12 : vector<8x64xf32>
    %14 = math.exp %13 : vector<8x64xf32>
    %cst_11 = arith.constant 1.000000e+00 : f32
    %15 = vector.broadcast %cst_11 : f32 to vector<8x64xf32>
    %16 = arith.addf %15, %14 : vector<8x64xf32>
    %17 = arith.divf %15, %16 : vector<8x64xf32>
    %c0_12 = arith.constant 0 : index
    %c0_13 = arith.constant 0 : index
    %18 = vector.load %arg6[%c0_12, %c0_13] : memref<8x64xf32, #tpu.memory_space<vmem>>, vector<8x64xf32>
    tpu.vector_store %arg6[%c0_12, %c0_13], %17 {strides = array<i32>} : memref<8x64xf32, #tpu.memory_space<vmem>>, vector<8x64xf32>,
    return
  }
  func.func @transform_0(%arg0: i32) -> (i32, i32) {
    %c0_i32 = arith.constant 0 : i32
    %c0_i32_0 = arith.constant 0 : i32
    return %arg0, %c0_i32 : i32, i32
  }
  func.func @transform_1(%arg0: i32) -> (i32, i32) {
    %c0_i32 = arith.constant 0 : i32
    %c0_i32_0 = arith.constant 0 : i32
    %c0_i32_1 = arith.constant 0 : i32
    return %c0_i32, %c0_i32_0 : i32, i32
  }
  func.func @transform_2(%arg0: i32) -> (i32, i32) {
    %c0_i32 = arith.constant 0 : i32
    %c0_i32_0 = arith.constant 0 : i32
    %c0_i32_1 = arith.constant 0 : i32
    return %c0_i32, %c0_i32_0 : i32, i32
  }
  func.func @transform_3(%arg0: i32) -> (i32, i32) {
    %c0_i32 = arith.constant 0 : i32
    %c0_i32_0 = arith.constant 0 : i32
    %c0_i32_1 = arith.constant 0 : i32
    return %c0_i32, %c0_i32_0 : i32, i32
  }
  func.func @transform_4(%arg0: i32) -> (i32, i32) {
    %c0_i32 = arith.constant 0 : i32
    %c0_i32_0 = arith.constant 0 : i32
    %c0_i32_1 = arith.constant 0 : i32
    return %c0_i32, %c0_i32_0 : i32, i32
  }
  func.func @transform_5(%arg0: i32) -> (i32, i32) {
    %c0_i32 = arith.constant 0 : i32
    %c0_i32_0 = arith.constant 0 : i32
    return %arg0, %c0_i32 : i32, i32
  }
}

</mosaic_0001>

<bundles_post_ra>
// kernel: tpu_custom_call.1
= control target key start
LH: loop header
LB: loop body
LE: loop exit
PB: predicated region body
PF: predicated region fallthrough
CT: control target
= control target key end

     0   :  { %10 = vsyncpa [#allocation3], 0  ;;  %s447_s0 = inlined_call_operand.hbm [shape: f32[2,8], index: 0, kind: input, shape index: {}]   ;;  %s448_s1 = inlined_call_operand.hbm [shape: f32[8,32], index: 1, kind: input, shape index: {}]   ;;  %s449_s2 = inlined_call_operand.vmem [shape: f32[1,32], index: 2, kind: input, shape index: {}]   ;;  %s450_s3 = inlined_call_operand.hbm [shape: f32[32,64], index: 3, kind: input, shape index: {}]   ;;  %s451_s4 = inlined_call_operand.vmem [shape: f32[1,64], index: 4, kind: input, shape index: {}]   ;;  %s452_s5 = inlined_call_operand.hbm [shape: f32[2,64], index: 5, kind: output, shape index: {}]  }
   0x1   :  { %11 = vsyncpa [#allocation6], 0 }
   0x2   :  { %12 = vsyncpa [#allocation4], 0 }
   0x3   :  { %17 = vsyncadd [#allocation3], 96  ;;  %s383_s18 = smov [#allocation5]   ;;  %s384_s20 = smov [#allocation2]  }
   0x4   :  { %s31_s19 = sshll.u32 %s383_s18, 4  ;;  %s18_s21 = sshll.u32 %s384_s20, 4  ;;  %s32_s19 = int_to_ptr.vmem [resolvable:$true] %s31_s19  ;;  %s19_s21 = int_to_ptr.vmem [resolvable:$true] %s18_s21 }
   0x5   :  { %s305_s22 = scalar_lea.vmem %s32_s19, 128  ;;  %p310_p1 = scmp.lt.s32.totalorder %s32_s19, %s32_s19 }
   0x6   :  { %p306_p0 = scmp.ne.s32.totalorder %s32_s19, %s305_s22  ;;  %p311_p2 = scmp.lt.s32.totalorder %s305_s22, %s305_s22 }
   0x8   :  { %p312_p3 = por %p311_p2, %p310_p1 }
   0xa   :  { %p313_p4 = pnand %p312_p3, %p306_p0 }
   0xc   :  { %316 = shalt.err (!%p313_p4)
}
   0xd   :  { %34 = dma.hbm_to_vmem [thread:$0]  %s448_s1, 128, %s32_s19, [#allocation6]  }
   0xe   :  { %s325_s25 = scalar_lea.vmem %s19_s21, 32  ;;  %s329_s26 = scalar_lea.vmem %s19_s21, 128 }
   0xf   :  { %p326_p5 = scmp.ne.s32.totalorder %s19_s21, %s325_s25  ;;  %p330_p6 = scmp.lt.s32.totalorder %s19_s21, %s19_s21 }
  0x10   :  { %p331_p7 = scmp.lt.s32.totalorder %s329_s26, %s325_s25 }
  0x12   :  { %p332_p8 = por %p331_p7, %p330_p6 }
  0x14   :  { %p333_p9 = pnand %p332_p8, %p326_p5 }
  0x16   :  { %336 = shalt.err (!%p333_p9)
}
  0x17   :  { %s385_s27 = smov 32   ;;  %s386_s28 = smov 2  }
  0x18   :  { %24 = dma.hbm_to_vmem [thread:$0]  %s447_s0, 32, %s19_s21, [#allocation3], %s385_s27, %s385_s27, %s386_s28  }
  0x19   :  { %s387_s6 = smov [#allocation7]  }
  0x1a   :  { %s42_s7 = sshll.u32 %s387_s6, 4  ;;  %s43_s7 = int_to_ptr.vmem [resolvable:$true] %s42_s7 }
  0x1b   :  { %s345_s1 = scalar_lea.vmem %s43_s7, 512  ;;  %p350_p11 = scmp.lt.s32.totalorder %s43_s7, %s43_s7 }
  0x1c   :  { %p346_p10 = scmp.ne.s32.totalorder %s43_s7, %s345_s1  ;;  %p351_p12 = scmp.lt.s32.totalorder %s345_s1, %s345_s1 }
  0x1e   :  { %p352_p13 = por %p351_p12, %p350_p11 }
  0x20   :  { %p353_p0 = pnand %p352_p13, %p346_p10 }
  0x22   :  { %356 = shalt.err (!%p353_p0)
}
  0x23   :  { %s388_s8 = smov 128   ;;  %s389_s9 = smov 8  }
  0x24   :  { %48 = dma.hbm_to_vmem [thread:$0]  %s450_s3, 512, %s43_s7, [#allocation6], %s388_s8, %s388_s8, %s389_s9  }
  0x25   :  { %377 = dma.done.wait [#allocation3], 128  }
  0x26   :  { %378 = vsyncadd [#allocation3], 4294967168 }
  0x27   :  { %379 = dma.done.wait [#allocation6], 640  }
  0x28   :  { %380 = vsyncadd [#allocation6], 4294966656  ;;  %v390_v0 = vmov 0.0   ;;  %vm391_vm0 = vmmov 0   ;;  %vm69_vm1 = vcmask 64512   ;;  %v61_v1 = vld [vmem:[#allocation5] sm:$0xff] }
  0x29   :  { %267 = vmatprep.subr.mxu0 %v390_v0  ;;  %269 = vmatprep.mubr.msk.f32.mxu0 %vm391_vm0, %v390_v0  ;;  %v60_v2 = vld [vmem:[#allocation2] sm:$0xff]  ;;  %v147_v3 = vld [vmem:[#allocation7 + $0x18] sm:$0xff]  ;;  %v145_v5 = vld [vmem:[#allocation7 + $0x8] sm:$0xff]  ;;  %vm155_vm2 = vcmask 261120   ;;  %vm235_vm3 = vcmask 523264  }
  0x2a   :  { %272 = vmatprep.subr.mxu1 %v390_v0  ;;  %280 = vmatprep.mubr.msk.f32.mxu1 %vm391_vm0, %v390_v0  ;;  %v146_v4 = vld [vmem:[#allocation7 + $0x10] sm:$0xff]  ;;  %v144_v6 = vld [vmem:[#allocation7] sm:$0xff] }
  0x2b   :  { %268 = vmatpush3.msra.mxu0 %v61_v1  ;;  %273 = vmatpush3.msra.mxu1 %v147_v3  ;;  %v255_v7 = vld [vmem:[%s449_s2] ss:$0 sm:$0xff] }
  0x2c   :  { %270 = vmatmul.mubr.msk.f32.vlgmr.msra.gmra.mxu0 %vm69_vm1, %v60_v2  ;;  %274 = vmatprep.subr.mxu1 %v390_v0  ;;  %v257_v12 = vld [vmem:[%s451_s4] ss:$0 sm:$0xff] }
  0x2d   :  { %275 = vmatpush3.msra.mxu1 %v146_v4 }
  0x2e   :  { %276 = vmatprep.subr.mxu1 %v390_v0 }
  0x2f   :  { %277 = vmatpush3.msra.mxu1 %v145_v5 }
  0x30   :  { %278 = vmatprep.subr.mxu1 %v390_v0 }
  0x31   :  { %279 = vmatpush3.msra.mxu1 %v144_v6 }
  0xec   :  { %v139_v8 = vpop.f32.mrf.mxu0 }
  0xed   :  { %v140_v9 = vadd.f32 %v255_v7, %v139_v8 }
  0xee   :  { %v271_v10 = vpop.f32.mrf.mxu0 }
  0xef   :  { %v143_v11 = vmax.f32 %v140_v9, 0.0 }
  0xf1   :  { %281 = vmatmul.mubr.msk.f32.vlgmr.msra.gmra.mxu1 %vm155_vm2, %v143_v11 }
 0x1b1   :  { %v225_v13 = vpop.f32.mrf.mxu1 }
 0x1b2   :  { %v226_v14 = vadd.f32 %v257_v12, %v225_v13 }
 0x1b3   :  { %v282_v15 = vpop.f32.mrf.mxu1 }
 0x1b4   :  { %v259_v16 = vmul.f32 -1.442695, %v226_v14 }
 0x1b6   :  { %293 = vpow2.f32 %v259_v16 }
 0x1c3   :  { %v294_v17 = vpop.eup %293 }
 0x1c4   :  { %v232_v18 = vadd.f32 1.0, %v294_v17 }
 0x1c6   :  { %295 = vrcp.f32 %v232_v18 }
 0x1d3   :  { %v296_v19 = vpop.eup %295 }
 0x1d4   :  { %236 = vst.msk [vmem:[#allocation8] sm:$0xff] %vm235_vm3, %v296_v19 }
 0x1d5   :  { %241 = vsyncadd [#allocation4], 96  ;;  %s392_s2 = smov [#allocation8]  }
 0x1d6   :  { %s242_s14 = sshll.u32 %s392_s2, 4  ;;  %s243_s14 = int_to_ptr.vmem [resolvable:$true] %s242_s14 }
 0x1d7   :  { %s357_s15 = scalar_lea.vmem %s243_s14, 32  ;;  %s361_s16 = scalar_lea.vmem %s243_s14, 128 }
 0x1d8   :  { %p358_p1 = scmp.ne.s32.totalorder %s243_s14, %s357_s15  ;;  %p362_p2 = scmp.lt.s32.totalorder %s243_s14, %s243_s14 }
 0x1d9   :  { %p363_p3 = scmp.lt.s32.totalorder %s361_s16, %s357_s15 }
 0x1db   :  { %p364_p4 = por %p363_p3, %p362_p2 }
 0x1dd   :  { %p365_p5 = pnand %p364_p4, %p358_p1 }
 0x1df   :  { %368 = shalt.err (!%p365_p5)
}
 0x1e0   :  { %248 = dma.vmem_to_hbm [thread:$0]  %s243_s14, 32, %s452_s5, [#allocation4], %s385_s27, %s385_s27, %s386_s28  }
 0x1e1   :  { %381 = dma.done.wait [#allocation4], 128  }
 0x1e2   :  { %382 = vsyncadd [#allocation4], 4294967168 }
 0x1e3   :  { %252 = vsyncpa [#allocation3], 1 }
 0x1e4   :  { %253 = vsyncpa [#allocation6], 1 }
 0x1e5   :  { %254 = vsyncpa [#allocation4], 1 }

</bundles_post_ra>
